<compile_context>
chip_gen: v7x
topology: tpu7x:2x2x1
jax: 0.10.0
libtpu: 0.0.40
codegen_flags: <defaults>
</compile_context>

<pallas_src>
import jax
import jax.numpy as jnp
from jax.experimental import pallas as pl
from jax.experimental.pallas import tpu as pltpu

IN_F = 66
HID = 100
HID_PAD = 128          # native 128-lane width
OUT_F = 1
BN_EPS = 1e-5
TB_MAX = 2048          # max batch-tile rows per grid step (tiny VMEM footprint)


def _round_up(n, m):
    return ((n + m - 1) // m) * m


def mlp_kernel(x_ref, w1_ref, b1_ref, w2_ref, o_ref):
    # x: (TB, 66), w1: (66, 128), b1: (1, 128), w2: (128, 1) -> o: (TB, 1)
    h = jnp.dot(x_ref[...], w1_ref[...], preferred_element_type=jnp.float32) + b1_ref[...]
    h = jnp.maximum(h, 0.0)          # ReLU; bias lane (value 1.0) passes through unchanged
    # BatchNorm affine + second Linear + its bias are all folded into this single matmul.
    y = jnp.dot(h, w2_ref[...], preferred_element_type=jnp.float32)
    o_ref[...] = jax.nn.sigmoid(y)   # EUP exp path


def mlp_forward(x, w1, b1, gamma, beta, running_mean, running_var, w2, b2):
    B = x.shape[0]

    # ---- one-time parameter folding (outside the hot path) -----------------
    scale = gamma / jnp.sqrt(running_var + BN_EPS)            # (HID,)
    shift = beta - running_mean * scale                       # (HID,)
    w2_eff = scale[:, None] * w2                              # (HID, 1)  BN folded into Linear2
    b2_eff = shift @ w2 + b2                                  # (OUT_F,)

    # Pad hidden dim 100 -> 128. Lane HID carries a constant 1.0 (via b1) through ReLU,
    # and w2 row HID holds b2_eff, so the final bias is applied by the matmul itself.
    w1_p = jnp.zeros((IN_F, HID_PAD), jnp.float32).at[:, :HID].set(w1)
    b1_p = jnp.zeros((1, HID_PAD), jnp.float32).at[0, :HID].set(b1)
    b1_p = b1_p.at[0, HID].set(1.0)
    w2_p = jnp.zeros((HID_PAD, OUT_F), jnp.float32).at[:HID, :].set(w2_eff)
    w2_p = w2_p.at[HID, :].set(b2_eff)

    # ---- batch-tiled, double-buffered pipeline ------------------------------
    tb = min(TB_MAX, _round_up(B, 8))
    grid = (pl.cdiv(B, tb),)

    out = pl.pallas_call(
        mlp_kernel,
        out_shape=jax.ShapeDtypeStruct((B, OUT_F), jnp.float32),
        grid=grid,
        in_specs=[
            pl.BlockSpec((tb, IN_F), lambda i: (i, 0)),        # streamed input rows
            pl.BlockSpec((IN_F, HID_PAD), lambda i: (0, 0)),   # resident weights
            pl.BlockSpec((1, HID_PAD), lambda i: (0, 0)),
            pl.BlockSpec((HID_PAD, OUT_F), lambda i: (0, 0)),
        ],
        out_specs=pl.BlockSpec((tb, OUT_F), lambda i: (i, 0)),
        compiler_params=pltpu.CompilerParams(
            dimension_semantics=("parallel",),
            vmem_limit_bytes=32 * 1024 * 1024,
        ),
    )(x, w1_p, b1_p, w2_p)
    return out


def init_params(key):
    """Deterministic init mimicking PyTorch defaults (uniform +/- 1/sqrt(fan_in))."""
    k1, k2, k3, k4 = jax.random.split(key, 4)
    bound1 = 1.0 / (IN_F ** 0.5)
    w1 = jax.random.uniform(k1, (IN_F, HID), jnp.float32, -bound1, bound1)
    b1 = jax.random.uniform(k2, (HID,), jnp.float32, -bound1, bound1)

    gamma = jnp.ones((HID,), jnp.float32)
    beta = jnp.zeros((HID,), jnp.float32)
    running_mean = jnp.zeros((HID,), jnp.float32)
    running_var = jnp.ones((HID,), jnp.float32)

    bound2 = 1.0 / (HID ** 0.5)
    w2 = jax.random.uniform(k3, (HID, OUT_F), jnp.float32, -bound2, bound2)
    b2 = jax.random.uniform(k4, (OUT_F,), jnp.float32, -bound2, bound2)
    return w1, b1, gamma, beta, running_mean, running_var, w2, b2


def reference_forward(x, w1, b1, gamma, beta, running_mean, running_var, w2, b2):
    h = x @ w1 + b1
    h = jnp.maximum(h, 0.0)
    h = (h - running_mean) / jnp.sqrt(running_var + BN_EPS) * gamma + beta
    y = h @ w2 + b2
    return jax.nn.sigmoid(y)


if __name__ == "__main__":
    key = jax.random.PRNGKey(0)
    kx, kp = jax.random.split(key)

    B = 8
    x = jax.random.normal(kx, (B, IN_F), jnp.float32)
    params = init_params(kp)

    out = mlp_forward(x, *params)
    out = jax.block_until_ready(out)

    ref = reference_forward(x, *params)
    assert out.shape == (B, OUT_F)
    assert jnp.allclose(out, ref, atol=1e-5, rtol=1e-5), "mismatch vs reference"

    print("KERNEL_OK")
</pallas_src>

<mosaic_0001>
module attributes {stable_mosaic.version = 11 : i64} {
  func.func @mlp_kernel(%arg0: i32, %arg1: memref<8x66xf32, #tpu.memory_space<vmem>>, %arg2: memref<66x128xf32, #tpu.memory_space<vmem>>, %arg3: memref<1x128xf32, #tpu.memory_space<vmem>>, %arg4: memref<128x1xf32, #tpu.memory_space<vmem>>, %arg5: memref<8x1xf32, #tpu.memory_space<vmem>>) attributes {dimension_semantics = [#tpu.dimension_semantics<parallel>], iteration_bounds = array<i64: 1>, scalar_prefetch = 0 : i64, scratch_operands = 0 : i64, tpu.core_type = #tpu.core_type<tc>, window_params = [{transform_indices = @transform_0, window_bounds = array<i64: 8, 66>}, {pipeline_mode = #tpu.pipeline_mode<synchronous>, transform_indices = @transform_1, window_bounds = array<i64: 66, 128>}, {pipeline_mode = #tpu.pipeline_mode<synchronous>, transform_indices = @transform_2, window_bounds = array<i64: 1, 128>}, {pipeline_mode = #tpu.pipeline_mode<synchronous>, transform_indices = @transform_3, window_bounds = array<i64: 128, 1>}, {transform_indices = @transform_4, window_bounds = array<i64: 8, 1>}]} {
    %c0 = arith.constant 0 : index
    %c0_0 = arith.constant 0 : index
    %0 = vector.load %arg1[%c0, %c0_0] : memref<8x66xf32, #tpu.memory_space<vmem>>, vector<8x66xf32>
    %c0_1 = arith.constant 0 : index
    %c0_2 = arith.constant 0 : index
    %1 = vector.load %arg2[%c0_1, %c0_2] : memref<66x128xf32, #tpu.memory_space<vmem>>, vector<66x128xf32>
    %cst = arith.constant dense<0.000000e+00> : vector<8x128xf32>
    %2 = tpu.matmul %0, %1, %cst {dimension_numbers = #tpu.dot_dimension_numbers<[1], [0], [0], [1], [0, 0, 1, 1], [], []>} : vector<8x66xf32>, vector<66x128xf32>, vector<8x128xf32> -> vector<8x128xf32>
    %c0_3 = arith.constant 0 : index
    %c0_4 = arith.constant 0 : index
    %3 = vector.load %arg3[%c0_3, %c0_4] : memref<1x128xf32, #tpu.memory_space<vmem>>, vector<1x128xf32>
    %4 = vector.broadcast %3 : vector<1x128xf32> to vector<8x128xf32>
    %5 = arith.addf %2, %4 : vector<8x128xf32>
    %cst_5 = arith.constant 0.000000e+00 : f32
    %6 = vector.broadcast %cst_5 : f32 to vector<8x128xf32>
    %7 = arith.maximumf %5, %6 : vector<8x128xf32>
    %c0_6 = arith.constant 0 : index
    %c0_7 = arith.constant 0 : index
    %8 = vector.load %arg4[%c0_6, %c0_7] : memref<128x1xf32, #tpu.memory_space<vmem>>, vector<128x1xf32>
    %cst_8 = arith.constant dense<0.000000e+00> : vector<8x1xf32>
    %9 = tpu.matmul %7, %8, %cst_8 {dimension_numbers = #tpu.dot_dimension_numbers<[1], [0], [0], [1], [0, 0, 1, 1], [], []>} : vector<8x128xf32>, vector<128x1xf32>, vector<8x1xf32> -> vector<8x1xf32>
    %10 = arith.negf %9 : vector<8x1xf32>
    %11 = math.exp %10 : vector<8x1xf32>
    %cst_9 = arith.constant 1.000000e+00 : f32
    %12 = vector.broadcast %cst_9 : f32 to vector<8x1xf32>
    %13 = arith.addf %12, %11 : vector<8x1xf32>
    %14 = arith.divf %12, %13 : vector<8x1xf32>
    %c0_10 = arith.constant 0 : index
    %c0_11 = arith.constant 0 : index
    %15 = vector.load %arg5[%c0_10, %c0_11] : memref<8x1xf32, #tpu.memory_space<vmem>>, vector<8x1xf32>
    tpu.vector_store %arg5[%c0_10, %c0_11], %14 {strides = array<i32>} : memref<8x1xf32, #tpu.memory_space<vmem>>, vector<8x1xf32>,
    return
  }
  func.func @transform_0(%arg0: i32) -> (i32, i32) {
    %c0_i32 = arith.constant 0 : i32
    %c0_i32_0 = arith.constant 0 : i32
    return %arg0, %c0_i32 : i32, i32
  }
  func.func @transform_1(%arg0: i32) -> (i32, i32) {
    %c0_i32 = arith.constant 0 : i32
    %c0_i32_0 = arith.constant 0 : i32
    %c0_i32_1 = arith.constant 0 : i32
    return %c0_i32, %c0_i32_0 : i32, i32
  }
  func.func @transform_2(%arg0: i32) -> (i32, i32) {
    %c0_i32 = arith.constant 0 : i32
    %c0_i32_0 = arith.constant 0 : i32
    %c0_i32_1 = arith.constant 0 : i32
    return %c0_i32, %c0_i32_0 : i32, i32
  }
  func.func @transform_3(%arg0: i32) -> (i32, i32) {
    %c0_i32 = arith.constant 0 : i32
    %c0_i32_0 = arith.constant 0 : i32
    %c0_i32_1 = arith.constant 0 : i32
    return %c0_i32, %c0_i32_0 : i32, i32
  }
  func.func @transform_4(%arg0: i32) -> (i32, i32) {
    %c0_i32 = arith.constant 0 : i32
    %c0_i32_0 = arith.constant 0 : i32
    return %arg0, %c0_i32 : i32, i32
  }
}

</mosaic_0001>

<bundles_post_ra>
// kernel: tpu_custom_call.1
= control target key start
LH: loop header
LB: loop body
LE: loop exit
PB: predicated region body
PF: predicated region fallthrough
CT: control target
= control target key end

     0   :  { %v341_v0 = vmov 0.0|0.0   ;;  %vm342_vm0 = vmmov 0   ;;  %v343_v4 = vmov 0.0   ;;  %vm38_vm1 = vcmask 1041408   ;;  %s465_s1 = inlined_call_operand.vmem [shape: f32[66,128], index: 1, kind: input, shape index: {}]   ;;  %s466_s3 = inlined_call_operand.vmem [shape: f32[128,1], index: 3, kind: input, shape index: {}]   ;;  %s467_s0 = inlined_call_operand.vmem [shape: f32[8,66], index: 0, kind: input, shape index: {}]   ;;  %s468_s2 = inlined_call_operand.vmem [shape: f32[1,128], index: 2, kind: input, shape index: {}]   ;;  %s469_s4 = inlined_call_operand.vmem [shape: f32[8,1], index: 4, kind: output, shape index: {}]  }
   0x1   :  { %298 = vmatprep.subr.bf16.mxu0 %v341_v0  ;;  %v18_v1 = vld [vmem:[%s465_s1] sm:$0xff]  ;;  %v19_v2 = vld [vmem:[%s465_s1 + $0x8] sm:$0xff]  ;;  %v20_v3 = vld [vmem:[%s465_s1 + $0x10] sm:$0xff]  ;;  %260 = vmatprep.mubr.msk.f32.mxu0 %vm342_vm0, %v343_v4  ;;  %vm34_vm2 = vcmask 539648   ;;  %vm205_vm3 = vcmask 7168  }
   0x2   :  { %v299_v5 = vpack.c.bf16 %v19_v2, %v18_v1  ;;  %v21_v6 = vld [vmem:[%s465_s1 + $0x18] sm:$0xff]  ;;  %310 = vmatprep.subr.bf16.mxu1 %v341_v0  ;;  %295 = vmatprep.mubr.msk.f32.mxu1 %vm342_vm0, %v343_v4  ;;  %v22_v8 = vld [vmem:[%s465_s1 + $0x20] sm:$0xff]  ;;  %v114_v10 = vld [vmem:[%s466_s3 + $0x8] sm:$0xff] }
   0x3   :  { %v302_v7 = vpack.c.bf16 %v21_v6, %v20_v3  ;;  %v113_v9 = vld [vmem:[%s466_s3] sm:$0xff]  ;;  %v23_v11 = vld [vmem:[%s465_s1 + $0x28] sm:$0xff]  ;;  %v115_v13 = vld [vmem:[%s466_s3 + $0x10] sm:$0xff] }
   0x4   :  { %300 = vmatpush3.bf16.msra.mxu0 %v299_v5  ;;  %v311_v12 = vpack.c.bf16 %v114_v10, %v113_v9  ;;  %v116_v14 = vld [vmem:[%s466_s3 + $0x18] sm:$0xff]  ;;  %v305_v16 = vpack.c.bf16 %v23_v11, %v22_v8  ;;  %v117_v17 = vld [vmem:[%s466_s3 + $0x20] sm:$0xff]  ;;  %v118_v18 = vld [vmem:[%s466_s3 + $0x28] sm:$0xff] }
   0x5   :  { %301 = vmatprep.subr.bf16.mxu0 %v341_v0  ;;  %v314_v15 = vpack.c.bf16 %v116_v14, %v115_v13  ;;  %v24_v19 = vld [vmem:[%s465_s1 + $0x30] sm:$0xff]  ;;  %v25_v20 = vld [vmem:[%s465_s1 + $0x38] sm:$0xff]  ;;  %v317_v21 = vpack.c.bf16 %v118_v18, %v117_v17  ;;  %v121_v26 = vld [vmem:[%s466_s3 + $0x40] sm:$0xff] }
   0x6   :  { %312 = vmatpush3.bf16.msra.mxu1 %v311_v12  ;;  %v308_v22 = vpack.c.bf16 %v25_v20, %v24_v19  ;;  %v119_v23 = vld [vmem:[%s466_s3 + $0x30] sm:$0xff]  ;;  %v120_v24 = vld [vmem:[%s466_s3 + $0x38] sm:$0xff]  ;;  %v122_v27 = vld [vmem:[%s466_s3 + $0x48] sm:$0xff] }
   0x7   :  { %313 = vmatprep.subr.bf16.mxu1 %v341_v0  ;;  %v320_v25 = vpack.c.bf16 %v120_v24, %v119_v23  ;;  %v26_v28 = vld [vmem:[%s465_s1 + $0x40] sm:$0x3]  ;;  %v323_v30 = vpack.c.bf16 %v122_v27, %v121_v26  ;;  %v123_v31 = vld [vmem:[%s466_s3 + $0x50] sm:$0xff]  ;;  %v124_v32 = vld [vmem:[%s466_s3 + $0x58] sm:$0xff] }
   0x8   :  { %303 = vmatpush3.bf16.msra.mxu0 %v302_v7  ;;  %v17_v29 = vld [vmem:[%s467_s0] sm:$0xff]  ;;  %v326_v33 = vpack.c.bf16 %v124_v32, %v123_v31  ;;  %v126_v35 = vld [vmem:[%s466_s3 + $0x68] sm:$0xff]  ;;  %v127_v37 = vld [vmem:[%s466_s3 + $0x70] sm:$0xff] }
   0x9   :  { %304 = vmatprep.subr.bf16.mxu0 %v341_v0  ;;  %v125_v34 = vld [vmem:[%s466_s3 + $0x60] sm:$0xff]  ;;  %v128_v38 = vld [vmem:[%s466_s3 + $0x78] sm:$0xff] }
   0xa   :  { %315 = vmatpush3.bf16.msra.mxu1 %v314_v15  ;;  %v329_v36 = vpack.c.bf16 %v126_v35, %v125_v34  ;;  %v332_v39 = vpack.c.bf16 %v128_v38, %v127_v37  ;;  %v211_v40 = vld [vmem:[%s468_s2] ss:$0 sm:$0xff] }
   0xb   :  { %316 = vmatprep.subr.bf16.mxu1 %v341_v0 }
   0xc   :  { %306 = vmatpush3.bf16.msra.mxu0 %v305_v16 }
   0xd   :  { %307 = vmatprep.subr.bf16.mxu0 %v341_v0 }
   0xe   :  { %318 = vmatpush3.bf16.msra.mxu1 %v317_v21 }
   0xf   :  { %319 = vmatprep.subr.bf16.mxu1 %v341_v0 }
  0x10   :  { %309 = vmatpush3.bf16.msra.mxu0 %v308_v22 }
  0x11   :  { %258 = vmatprep.subr.mxu0 %v343_v4 }
  0x12   :  { %321 = vmatpush3.bf16.msra.mxu1 %v320_v25 }
  0x13   :  { %322 = vmatprep.subr.bf16.mxu1 %v341_v0 }
  0x14   :  { %259 = vmatpush3.msk.msra.mxu0 %vm38_vm1, %v26_v28 }
  0x15   :  { %261 = vmatmul.mubr.msk.f32.vlgmr.msra.gmra.mrb[0].mxu0 %vm34_vm2, %v17_v29 }
  0x16   :  { %324 = vmatpush3.bf16.msra.mxu1 %v323_v30 }
  0x17   :  { %325 = vmatprep.subr.bf16.mxu1 %v341_v0 }
  0x1a   :  { %327 = vmatpush3.bf16.msra.mxu1 %v326_v33 }
  0x1b   :  { %328 = vmatprep.subr.bf16.mxu1 %v341_v0 }
  0x1e   :  { %330 = vmatpush3.bf16.msra.mxu1 %v329_v36 }
  0x1f   :  { %331 = vmatprep.subr.bf16.mxu1 %v341_v0 }
  0x22   :  { %333 = vmatpush3.bf16.msra.mxu1 %v332_v39 }
  0xe8   :  { %v108_v41 = vpop.f32.mrb[0].mxu0 }
  0xe9   :  { %v109_v42 = vadd.f32 %v211_v40, %v108_v41  ;;  %v262_v43 = vpop.f32.mrb[1].mxu0 }
  0xeb   :  { %v112_v44 = vmax.f32 %v109_v42, 0.0 }
  0xed   :  { %296 = vmatmul.mubr.f32.vlgmr.msra.gmra.mrb[0].mxu1 %v112_v44 }
 0x1c0   :  { %v195_v45 = vpop.f32.mrb[0].mxu1 }
 0x1c1   :  { %v214_v46 = vmul.f32 -1.442695, %v195_v45  ;;  %v297_v47 = vpop.f32.mrb[1].mxu1 }
 0x1c3   :  { %337 = vpow2.f32 %v214_v46 }
 0x1cd   :  { %v338_v48 = vpop.eup %337 }
 0x1ce   :  { %v202_v49 = vadd.f32 1.0, %v338_v48 }
 0x1d0   :  { %339 = vrcp.f32 %v202_v49 }
 0x1da   :  { %v340_v50 = vpop.eup %339 }
 0x1db   :  { %206 = vst.msk [vmem:[%s469_s4] sm:$0xff] %vm205_vm3, %v340_v50 }

</bundles_post_ra>
